<compile_context>
chip_gen: v7x
topology: tpu7x:2x2x1
jax: 0.10.0
libtpu: 0.0.40
codegen_flags: <defaults>
</compile_context>

<pallas_src>
from functools import partial

import numpy as np
import jax
import jax.numpy as jnp
from jax.experimental import pallas as pl
from jax.experimental.pallas import tpu as pltpu

DIM, DIMH = 2, 16   # LseICNN defaults
_LANE = 128


def _lse_kernel(xT_ref, w_ref, b_ref, out_ref):
    # xT_ref: (DIM, tb)    -- batch on the lane axis
    # w_ref : (DIMH, DIM)  -- PyTorch nn.Linear weight layout (out_features, in_features)
    # b_ref : (DIMH, 1)
    # out   : (1, tb)      -- lane-dense logsumexp result
    xT = xT_ref[...]
    w = w_ref[...]
    dim = xT.shape[0]

    # VPU broadcast-MAC (exact f32) instead of a K=dim MXU matmul with tiny K.
    h = b_ref[...] + w[:, 0:1] * xT[0:1, :]          # (DIMH, tb)
    for k in range(1, dim):                          # dim is static (=2): unrolled
        h = h + w[:, k:k + 1] * xT[k:k + 1, :]

    # numerically-stable logsumexp over the feature (sublane) axis
    m = jnp.max(h, axis=0, keepdims=True)            # (1, tb)
    s = jnp.sum(jnp.exp(h - m), axis=0, keepdims=True)
    out_ref[...] = m + jnp.log(s)


def _pick_tile(b_pad, tb):
    """Round tb up to a lane multiple, clamp to the padded batch, and keep >=2
    grid steps whenever the batch allows it (feeds both TensorCores on v7x)."""
    tb = max(_LANE, pl.cdiv(int(tb), _LANE) * _LANE)
    tb = min(tb, b_pad)
    if b_pad >= 2 * _LANE and tb >= b_pad:
        tb = pl.cdiv(pl.cdiv(b_pad, 2), _LANE) * _LANE
    return tb


def _run(xT_pad, w32, b_col, tb):
    dim, b_pad = xT_pad.shape
    dimh = w32.shape[0]
    n_steps = pl.cdiv(b_pad, tb)

    # rough per-call VMEM need: double-buffered (sublane-padded) xT/out blocks
    # plus the (dimh, tb) f32 intermediates; only pass an explicit limit when a
    # swept tb approaches v5e's 16 MiB scoped default.
    vmem_need = 2 * 2 * (8 * tb * 4) + 2 * (dimh * tb * 4) + (1 << 20)
    if vmem_need > (12 << 20):
        cparams = pltpu.CompilerParams(dimension_semantics=("parallel",),
                                       vmem_limit_bytes=int(vmem_need))
    else:
        cparams = pltpu.CompilerParams(dimension_semantics=("parallel",))

    return pl.pallas_call(
        _lse_kernel,
        out_shape=jax.ShapeDtypeStruct((1, b_pad), jnp.float32),
        grid_spec=pl.GridSpec(
            grid=(n_steps,),
            in_specs=[
                pl.BlockSpec((dim, tb), lambda i: (0, i)),     # x^T batch tile
                pl.BlockSpec((dimh, dim), lambda i: (0, 0)),   # weight (grid-invariant)
                pl.BlockSpec((dimh, 1), lambda i: (0, 0)),     # bias column (grid-invariant)
            ],
            out_specs=pl.BlockSpec((1, tb), lambda i: (0, i)),
        ),
        compiler_params=cparams,
    )(xT_pad, w32, b_col)


@partial(jax.jit, static_argnames=("tb",))
def _fwd_from_x(x, w, b, tb):
    B, _ = x.shape
    dimh = w.shape[0]
    b_pad = pl.cdiv(B, _LANE) * _LANE                # pad only to the 128-lane grain
    tile = _pick_tile(b_pad, tb)
    # cast + pad + transpose fused by XLA into one copy (we are inside jit)
    xT = jnp.pad(x.astype(jnp.float32), ((0, b_pad - B), (0, 0))).T
    out = _run(xT, w.astype(jnp.float32),
               b.astype(jnp.float32).reshape(dimh, 1), tile)
    return out[0, :B]


@partial(jax.jit, static_argnames=("tb",))
def _fwd_from_xT(xT, w, b, tb):
    _, B = xT.shape
    dimh = w.shape[0]
    b_pad = pl.cdiv(B, _LANE) * _LANE
    tile = _pick_tile(b_pad, tb)
    xT_pad = jnp.pad(xT.astype(jnp.float32), ((0, 0), (0, b_pad - B)))
    out = _run(xT_pad, w.astype(jnp.float32),
               b.astype(jnp.float32).reshape(dimh, 1), tile)
    return out[0, :B]


def lse_icnn_forward(x, w, b, tb=8192):
    """x: (B, dim), w: (dimh, dim), b: (dimh,). Returns logsumexp(x @ w.T + b, -1), shape (B,)."""
    return _fwd_from_x(x, w, b, tb=int(tb))


def lse_icnn_forward_T(xT, w, b, tb=8192):
    """Fast path: x already in (dim, B) batch-on-lanes layout (no wrapper transpose)."""
    return _fwd_from_xT(xT, w, b, tb=int(tb))


def lse_icnn_reference(x, w, b):
    # Pure-JAX reference: nn.Linear followed by stable logsumexp over the last dim.
    h = jnp.dot(x.astype(jnp.float32), w.T,
                precision=jax.lax.Precision.HIGHEST) + b
    return jax.scipy.special.logsumexp(h, axis=-1)


if __name__ == "__main__":
    key = jax.random.PRNGKey(0)
    kx, kw, kb, kx2 = jax.random.split(key, 4)

    # PyTorch nn.Linear default init: U(-1/sqrt(fan_in), 1/sqrt(fan_in))
    bound = 1.0 / np.sqrt(DIM)
    w = jax.random.uniform(kw, (DIMH, DIM), jnp.float32, -bound, bound)
    b = jax.random.uniform(kb, (DIMH,), jnp.float32, -bound, bound)

    # small ragged batch (pads to a single 128-lane tile)
    x_small = jax.random.normal(kx, (16, DIM), jnp.float32)
    out_small = jax.block_until_ready(lse_icnn_forward(x_small, w, b))
    ref_small = lse_icnn_reference(x_small, w, b)
    assert out_small.shape == (16,)
    np.testing.assert_allclose(np.asarray(out_small), np.asarray(ref_small),
                               rtol=1e-5, atol=1e-5)

    # larger ragged batch: b_pad=384, tb rounds to 256 -> 2 grid steps with a
    # remainder tile (exercises pl.cdiv raggedness + padding slice-off)
    x_big = jax.random.normal(kx2, (300, DIM), jnp.float32)
    out_big = jax.block_until_ready(lse_icnn_forward(x_big, w, b, tb=256))
    ref_big = lse_icnn_reference(x_big, w, b)
    assert out_big.shape == (300,)
    np.testing.assert_allclose(np.asarray(out_big), np.asarray(ref_big),
                               rtol=1e-5, atol=1e-5)

    # default large tile (clamped + capped so the grid keeps >=2 parallel steps)
    out_big2 = jax.block_until_ready(lse_icnn_forward(x_big, w, b))
    np.testing.assert_allclose(np.asarray(out_big2), np.asarray(ref_big),
                               rtol=1e-5, atol=1e-5)

    # transposed-input fast path (no wrapper-side transpose at all)
    out_T = jax.block_until_ready(lse_icnn_forward_T(jnp.asarray(x_big).T, w, b))
    assert out_T.shape == (300,)
    np.testing.assert_allclose(np.asarray(out_T), np.asarray(ref_big),
                               rtol=1e-5, atol=1e-5)

    print("KERNEL_OK")
</pallas_src>

<mosaic_0001>
module attributes {stable_mosaic.version = 11 : i64} {
  func.func @_lse_kernel(%arg0: i32, %arg1: memref<2x128xf32, #tpu.memory_space<vmem>>, %arg2: memref<16x2xf32, #tpu.memory_space<vmem>>, %arg3: memref<16x1xf32, #tpu.memory_space<vmem>>, %arg4: memref<1x128xf32, #tpu.memory_space<vmem>>) attributes {dimension_semantics = [#tpu.dimension_semantics<parallel>], iteration_bounds = array<i64: 1>, scalar_prefetch = 0 : i64, scratch_operands = 0 : i64, tpu.core_type = #tpu.core_type<tc>, window_params = [{transform_indices = @transform_0, window_bounds = array<i64: 2, 128>}, {pipeline_mode = #tpu.pipeline_mode<synchronous>, transform_indices = @transform_1, window_bounds = array<i64: 16, 2>}, {pipeline_mode = #tpu.pipeline_mode<synchronous>, transform_indices = @transform_2, window_bounds = array<i64: 16, 1>}, {transform_indices = @transform_3, window_bounds = array<i64: 1, 128>}]} {
    %c0 = arith.constant 0 : index
    %c0_0 = arith.constant 0 : index
    %0 = vector.load %arg1[%c0, %c0_0] : memref<2x128xf32, #tpu.memory_space<vmem>>, vector<2x128xf32>
    %c0_1 = arith.constant 0 : index
    %c0_2 = arith.constant 0 : index
    %1 = vector.load %arg2[%c0_1, %c0_2] : memref<16x2xf32, #tpu.memory_space<vmem>>, vector<16x2xf32>
    %c0_3 = arith.constant 0 : index
    %c0_4 = arith.constant 0 : index
    %2 = vector.load %arg3[%c0_3, %c0_4] : memref<16x1xf32, #tpu.memory_space<vmem>>, vector<16x1xf32>
    %3 = vector.extract_strided_slice %1 {offsets = [0, 0], sizes = [16, 1], strides = [1, 1]} : vector<16x2xf32> to vector<16x1xf32>
    %4 = vector.extract_strided_slice %0 {offsets = [0, 0], sizes = [1, 128], strides = [1, 1]} : vector<2x128xf32> to vector<1x128xf32>
    %5 = vector.broadcast %3 : vector<16x1xf32> to vector<16x128xf32>
    %6 = vector.broadcast %4 : vector<1x128xf32> to vector<16x128xf32>
    %7 = arith.mulf %5, %6 : vector<16x128xf32>
    %8 = vector.broadcast %2 : vector<16x1xf32> to vector<16x128xf32>
    %9 = arith.addf %8, %7 : vector<16x128xf32>
    %10 = vector.extract_strided_slice %1 {offsets = [0, 1], sizes = [16, 1], strides = [1, 1]} : vector<16x2xf32> to vector<16x1xf32>
    %11 = vector.extract_strided_slice %0 {offsets = [1, 0], sizes = [1, 128], strides = [1, 1]} : vector<2x128xf32> to vector<1x128xf32>
    %12 = vector.broadcast %10 : vector<16x1xf32> to vector<16x128xf32>
    %13 = vector.broadcast %11 : vector<1x128xf32> to vector<16x128xf32>
    %14 = arith.mulf %12, %13 : vector<16x128xf32>
    %15 = arith.addf %9, %14 : vector<16x128xf32>
    %cst = arith.constant dense<0xFF800000> : vector<128xf32>
    %16 = vector.multi_reduction <maximumf>, %15, %cst [0] : vector<16x128xf32> to vector<128xf32>
    %17 = vector.shape_cast %16 : vector<128xf32> to vector<1x128xf32>
    %18 = vector.broadcast %17 : vector<1x128xf32> to vector<16x128xf32>
    %19 = arith.subf %15, %18 : vector<16x128xf32>
    %20 = math.exp %19 : vector<16x128xf32>
    %cst_5 = arith.constant dense<0.000000e+00> : vector<128xf32>
    %21 = vector.multi_reduction <add>, %20, %cst_5 [0] : vector<16x128xf32> to vector<128xf32>
    %22 = vector.shape_cast %21 : vector<128xf32> to vector<1x128xf32>
    %23 = math.log %22 : vector<1x128xf32>
    %24 = arith.addf %17, %23 : vector<1x128xf32>
    %c0_6 = arith.constant 0 : index
    %c0_7 = arith.constant 0 : index
    %25 = vector.load %arg4[%c0_6, %c0_7] : memref<1x128xf32, #tpu.memory_space<vmem>>, vector<1x128xf32>
    tpu.vector_store %arg4[%c0_6, %c0_7], %24 {strides = array<i32>} : memref<1x128xf32, #tpu.memory_space<vmem>>, vector<1x128xf32>,
    return
  }
  func.func @transform_0(%arg0: i32) -> (i32, i32) {
    %c0_i32 = arith.constant 0 : i32
    %c0_i32_0 = arith.constant 0 : i32
    return %c0_i32, %arg0 : i32, i32
  }
  func.func @transform_1(%arg0: i32) -> (i32, i32) {
    %c0_i32 = arith.constant 0 : i32
    %c0_i32_0 = arith.constant 0 : i32
    %c0_i32_1 = arith.constant 0 : i32
    return %c0_i32, %c0_i32_0 : i32, i32
  }
  func.func @transform_2(%arg0: i32) -> (i32, i32) {
    %c0_i32 = arith.constant 0 : i32
    %c0_i32_0 = arith.constant 0 : i32
    %c0_i32_1 = arith.constant 0 : i32
    return %c0_i32, %c0_i32_0 : i32, i32
  }
  func.func @transform_3(%arg0: i32) -> (i32, i32) {
    %c0_i32 = arith.constant 0 : i32
    %c0_i32_0 = arith.constant 0 : i32
    return %c0_i32, %arg0 : i32, i32
  }
}

</mosaic_0001>

<bundles_post_ra>
// kernel: _fwd_from_x.1
= control target key start
LH: loop header
LB: loop body
LE: loop exit
PB: predicated region body
PF: predicated region fallthrough
CT: control target
= control target key end

     0   :  { %v103_v0 = vmov 0   ;;  %v104_v5 = vmov 1   ;;  %v29_v6 = vlaneseq  ;;  %s143_s2 = inlined_call_operand.vmem [shape: f32[16,1], index: 2, kind: input, shape index: {}]   ;;  %s144_s1 = inlined_call_operand.vmem [shape: f32[16,2], index: 1, kind: input, shape index: {}]   ;;  %s145_s0 = inlined_call_operand.vmem [shape: f32[2,128], index: 0, kind: input, shape index: {}]   ;;  %s146_s3 = inlined_call_operand.vmem [shape: f32[1,128], index: 3, kind: output, shape index: {}]  }
   0x1   :  { %94 = vset.pattern.permute.xlu1 %v103_v0  ;;  %93 = vset.pattern.permute.xlu0 %v103_v0  ;;  %v17_v1 = vld [vmem:[%s143_s2] sm:$0xff]  ;;  %v18_v3 = vld [vmem:[%s143_s2 + $0x8] sm:$0xff] }
   0x2   :  { %v15_v2 = vld [vmem:[%s144_s1] sm:$0xff]  ;;  %37 = vperm.xlu1 %94, %v17_v1   ;;  %v16_v4 = vld [vmem:[%s144_s1 + $0x8] sm:$0xff]  ;;  %v30_v7 = vshrl.u32 %v29_v6, 7 }
   0x3   :  { %21 = vperm.xlu0 %93, %v15_v2   ;;  %v14_v9 = vld [vmem:[%s145_s0] sm:$0x3] }
   0x4   :  { %v31_v8 = vsub.s32 0, %v30_v7  ;;  %v57_v13 = vsub.s32 1, %v30_v7 }
   0x6   :  { %42 = vperm.xlu1 %94, %v18_v3   ;;  %v32_v12 = vrot.slane %v14_v9, %v31_v8  ;;  %v58_v18 = vrot.slane %v14_v9, %v57_v13 }
   0x7   :  { %26 = vperm.xlu0 %93, %v16_v4  }
   0xa   :  { %96 = vset.pattern.permute.xlu1 %v104_v5 }
   0xb   :  { %95 = vset.pattern.permute.xlu0 %v104_v5  ;;  %52 = vperm.xlu1 %96, %v16_v4  }
   0xc   :  { %48 = vperm.xlu0 %95, %v15_v2  }
  0x81   :  { %v38_v10 = vpop.permute.xlu1 %37 }
  0x82   :  { %v22_v11 = vpop.permute.xlu0 %21 }
  0x83   :  { %v33_v16 = vmul.f32 %v32_v12, %v22_v11 }
  0x85   :  { %v43_v14 = vpop.permute.xlu1 %42  ;;  %v45_v21 = vadd.f32 %v38_v10, %v33_v16 }
  0x86   :  { %v27_v15 = vpop.permute.xlu0 %26 }
  0x87   :  { %v34_v17 = vmul.f32 %v32_v12, %v27_v15 }
  0x89   :  { %v46_v22 = vadd.f32 %v43_v14, %v34_v17 }
  0x8a   :  { %v53_v19 = vpop.permute.xlu1 %52 }
  0x8b   :  { %v49_v20 = vpop.permute.xlu0 %48  ;;  %v60_v23 = vmul.f32 %v58_v18, %v53_v19 }
  0x8c   :  { %v59_v24 = vmul.f32 %v58_v18, %v49_v20 }
  0x8d   :  { %v62_v25 = vadd.f32 %v60_v23, %v46_v22 }
  0x8e   :  { %v61_v26 = vadd.f32 %v59_v24, %v45_v21 }
  0x90   :  { %v63_v27 = vmax.f32 %v61_v26, %v62_v25 }
  0x92   :  { %v64_v28 = vrot.slane %v63_v27, 4 }
  0x94   :  { %v65_v29 = vmax.f32 %v63_v27, %v64_v28 }
  0x96   :  { %v66_v30 = vrot.slane %v65_v29, 2 }
  0x98   :  { %v67_v31 = vmax.f32 %v65_v29, %v66_v30 }
  0x9a   :  { %v68_v32 = vrot.slane %v67_v31, 1 }
  0x9c   :  { %v69_v33 = vmax.f32 %v67_v31, %v68_v32 }
  0x9e   :  { %v70_v34 = vsub.f32 %v61_v26, %v69_v33  ;;  %v71_v35 = vsub.f32 %v62_v25, %v69_v33 }
  0xa0   :  { %v72_v36 = vmul.f32 1.442695, %v70_v34  ;;  %v74_v37 = vmul.f32 1.442695, %v71_v35 }
  0xa2   :  { %97 = vpow2.f32 %v72_v36 }
  0xa3   :  { %99 = vpow2.f32 %v74_v37 }
  0xac   :  { %v98_v38 = vpop.eup %97 }
  0xad   :  { %v100_v39 = vpop.eup %99 }
  0xae   :  { %v76_v40 = vadd.f32 %v100_v39, %v98_v38 }
  0xb0   :  { %v77_v41 = vrot.slane %v76_v40, 4 }
  0xb2   :  { %v78_v42 = vadd.f32 %v77_v41, %v76_v40 }
  0xb4   :  { %v79_v43 = vrot.slane %v78_v42, 2 }
  0xb6   :  { %v80_v44 = vadd.f32 %v79_v43, %v78_v42 }
  0xb8   :  { %v81_v45 = vrot.slane %v80_v44, 1 }
  0xba   :  { %v82_v46 = vadd.f32 %v81_v45, %v80_v44 }
  0xbc   :  { %101 = vlog2.f32 %v82_v46 }
  0xc6   :  { %v102_v47 = vpop.eup %101 }
  0xc7   :  { %v84_v48 = vmul.f32 0.6931472, %v102_v47 }
  0xc9   :  { %v85_v49 = vadd.f32 %v84_v48, %v69_v33 }
  0xcb   :  { %86 = vst [vmem:[%s146_s3] sm:$0x1] %v85_v49 }

</bundles_post_ra>
